<compile_context>
chip_gen: v7x
topology: tpu7x:2x2x1
jax: 0.10.0
libtpu: 0.0.40
codegen_flags: <defaults>
</compile_context>

<pallas_src>
import functools

import jax
import jax.numpy as jnp
from jax import lax
from jax.experimental import pallas as pl
from jax.experimental.pallas import tpu as pltpu


def _round_up(x, m):
    return (x + m - 1) // m * m


def _vmem_capacity_bytes():
    """Per-core VMEM capacity; conservative 64 MiB (v7x) fallback."""
    try:
        info = pltpu.get_tpu_info()
        cap = getattr(info, "vmem_capacity_bytes", None)
        if cap:
            return int(cap)
    except Exception:
        pass
    return 64 * 1024 * 1024


def _conv_tile(xa_ref, xb_ref, w_ref, o_ref, *, fuse, th, wo, cs, cb):
    """4x4/stride-2 conv on one row tile via the 2x2 space-to-depth taps.

    Returns the f32 conv tile flattened to (th*wo, cb).
      fuse=True : one MXU dot with contraction 4*cs (small-Cin, lane-dense LHS).
      fuse=False: 4 accumulating dots written in place into o_ref; the dh=1
                  taps use xa rows 1..th-1 plus a small halo dot from xb, so
                  there is no full-slab concatenate.
    """
    if fuse:
        xa = xa_ref[...]                                          # (th, Ws, cs) bf16
        if th > 1:
            x_hi = jnp.concatenate([xa[1:], xb_ref[...]], axis=0)  # rows 1..th
        else:
            x_hi = xb_ref[...]
        lhs = jnp.concatenate(
            [xa[:, 0:wo, :], xa[:, 1:wo + 1, :],
             x_hi[:, 0:wo, :], x_hi[:, 1:wo + 1, :]], axis=-1)     # (th, wo, 4*cs)
        acc = jnp.dot(lhs.reshape(th * wo, 4 * cs), w_ref[...],
                      preferred_element_type=jnp.float32)          # (th*wo, cb)
        return acc

    def tap(rows_ref, lo, hi, dw, widx):
        m = hi - lo
        patch = rows_ref[lo:hi, dw:dw + wo, :].reshape(m * wo, cs)
        y = jnp.dot(patch, w_ref[widx], preferred_element_type=jnp.float32)
        return y.reshape(m, wo, cb)

    # dh = 0 taps use slab rows 0..th-1 (all of xa).
    o_ref[...] = tap(xa_ref, 0, th, 0, 0) + tap(xa_ref, 0, th, 1, 1)
    # dh = 1 taps use slab rows 1..th: xa rows 1..th-1 feed output rows 0..th-2,
    # the 1-row halo (xb) feeds output row th-1.
    if th > 1:
        o_ref[0:th - 1] += tap(xa_ref, 1, th, 0, 2) + tap(xa_ref, 1, th, 1, 3)
    o_ref[th - 1:th] += tap(xb_ref, 0, 1, 0, 2) + tap(xb_ref, 0, 1, 1, 3)
    return o_ref[...].reshape(th * wo, cb)


def _disc_block_kernel(xa_ref, xb_ref, w_ref, o_ref, *scratch, fuse, use_norm,
                       two_phase, eps, neg_slope, th, wo, cs, cb, hw_total):
    y = _conv_tile(xa_ref, xb_ref, w_ref, o_ref,
                   fuse=fuse, th=th, wo=wo, cs=cs, cb=cb)          # (th*wo, cb) f32

    if not use_norm:
        z = jnp.maximum(y, neg_slope * y)                           # LeakyReLU(0.2)
        o_ref[...] = z.reshape(th, wo, cb)
        return

    inv_n = 1.0 / float(hw_total)

    if not two_phase:
        # Whole image in one tile: centered (numerically robust) InstanceNorm.
        mean = jnp.sum(y, axis=0, keepdims=True) * inv_n            # (1, cb)
        yc = y - mean
        var = jnp.sum(yc * yc, axis=0, keepdims=True) * inv_n
        z = yc * lax.rsqrt(var + eps)
        z = jnp.maximum(z, neg_slope * z)
        o_ref[...] = z.reshape(th, wo, cb)
        return

    # Two-phase fallback (image does not fit one tile): phase 0 accumulates
    # per-channel sum / sum-of-squares, phase 1 recomputes the conv tile and
    # normalizes.  The output window is parked on row-block 0 during phase 0
    # and is fully overwritten by the phase-1 r==0 tile before any writeback,
    # so phase 0 performs no extra output store.
    sum_ref, ssq_ref = scratch
    p = pl.program_id(1)   # 0: accumulate stats, 1: normalize + store
    r = pl.program_id(2)

    @pl.when(jnp.logical_and(p == 0, r == 0))
    def _init():
        sum_ref[...] = jnp.zeros_like(sum_ref)
        ssq_ref[...] = jnp.zeros_like(ssq_ref)

    @pl.when(p == 0)
    def _stats():
        sum_ref[...] += jnp.sum(y, axis=0, keepdims=True)
        ssq_ref[...] += jnp.sum(y * y, axis=0, keepdims=True)

    @pl.when(p == 1)
    def _finalize():
        mean = sum_ref[...] * inv_n                                  # (1, cb)
        var = jnp.maximum(ssq_ref[...] * inv_n - mean * mean, 0.0)
        z = (y - mean) * lax.rsqrt(var + eps)
        z = jnp.maximum(z, neg_slope * z)
        o_ref[...] = z.reshape(th, wo, cb)


@functools.partial(jax.jit, static_argnames=("stride", "padding", "use_norm",
                                             "eps", "neg_slope", "max_tile_rows"))
def discriminator_block_forward(x_nchw, weight_oihw, *, stride=2, padding=1,
                                use_norm=False, eps=1e-5, neg_slope=0.2,
                                max_tile_rows=None):
    """x_nchw: (N, Cin, H, W) f32; weight_oihw: (Cout, Cin, 4, 4) f32 -> NCHW f32."""
    N, Cin, H, W = x_nchw.shape
    Cout, Cin_w, K, K2 = weight_oihw.shape
    if K != 4 or K2 != 4 or stride != 2 or padding != 1:
        raise NotImplementedError("kernel is specialized for kernel=4, stride=2, padding=1")
    if Cin_w != Cin:
        raise ValueError("weight / input channel mismatch")
    if H % 2 or W % 2:
        raise NotImplementedError("H and W must be even")

    Ho, Wo = H // 2, W // 2
    Hs, Ws = Ho + 1, Wo + 1            # space-to-depth extents (incl. halo row/col)
    Cp = _round_up(Cin, 8)             # small channel pad for alignment
    Cs = 4 * Cp                        # per-tap contraction dim after s2d
    Coutp = _round_up(Cout, 128)       # lane-dense output stores
    fuse = Cs < 256                    # small-Cin: fuse the 4 taps into one K=4*Cs dot

    # ---- layout glue: cast to bf16 FIRST so the NHWC transpose / pad /
    # space-to-depth relayout moves half the bytes (review item 10) ----
    xb16 = x_nchw.astype(jnp.bfloat16)
    x_nhwc = jnp.transpose(xb16, (0, 2, 3, 1))
    xp = jnp.pad(x_nhwc, ((0, 0), (padding, padding), (padding, padding),
                          (0, Cp - Cin)))
    xs = jnp.transpose(xp.reshape(N, Hs, 2, Ws, 2, Cp),
                       (0, 1, 3, 2, 4, 5)).reshape(N, Hs, Ws, Cs)

    # Weight (Cout, Cin, 4, 4): kh = 2*dh+ph, kw = 2*dw+pw -> (tap, (ph,pw,ci), co)
    w6 = weight_oihw.reshape(Cout, Cin, 2, 2, 2, 2)        # (co, ci, dh, ph, dw, pw)
    wt = jnp.transpose(w6, (2, 4, 3, 5, 1, 0))             # (dh, dw, ph, pw, ci, co)
    wt = jnp.pad(wt, ((0, 0), (0, 0), (0, 0), (0, 0),
                      (0, Cp - Cin), (0, Coutp - Cout)))
    wm = wt.reshape(4, Cs, Coutp).astype(jnp.bfloat16)
    if fuse:
        wm = wm.reshape(4 * Cs, Coutp)

    # ---- generation-aware tile sizing (review items 1 & 2) ----
    vmem_cap = _vmem_capacity_bytes()
    vmem_limit = max(32 * 1024 * 1024,
                     min(vmem_cap - 8 * 1024 * 1024, 112 * 1024 * 1024))
    tile_budget = int(vmem_limit * 0.85)
    # NOTE: the weight block has a constant index map; pl.Buffered(1) would
    # halve this, we keep the portable default double buffer and account for it.
    w_bytes = 2 * (4 * Cs * Coutp * 2)

    def working_set(th_):
        out_t = th_ * Wo * Coutp * 4
        in_t = th_ * Ws * Cs * 2
        halo_t = Ws * Cs * 2
        tmp = 2 * out_t + in_t + (th_ * Wo * 4 * Cs * 2 if fuse
                                  else 2 * th_ * Wo * Cs * 2)
        return 2 * out_t + 2 * in_t + 2 * halo_t + w_bytes + tmp

    prefer_full = use_norm             # R == 1 avoids the two-phase conv recompute
    cap_rows = Ho if prefer_full else max(1, min(Ho, 4096 // max(Wo, 1)))
    if max_tile_rows is not None:
        cap_rows = max(1, min(cap_rows, max_tile_rows))
    TH = 1
    for th_ in range(1, cap_rows + 1):
        if Ho % th_ == 0 and working_set(th_) <= tile_budget:
            TH = th_
    R = Ho // TH

    kern_common = dict(fuse=fuse, use_norm=use_norm, eps=eps, neg_slope=neg_slope,
                       wo=Wo, cs=Cs, hw_total=Ho * Wo)

    if not use_norm:
        grid = (N, R)
        in_specs = [
            pl.BlockSpec((None, TH, Ws, Cs), lambda n, r: (n, r, 0, 0)),
            pl.BlockSpec((None, 1, Ws, Cs), lambda n, r: (n, (r + 1) * TH, 0, 0)),
            (pl.BlockSpec((4 * Cs, Coutp), lambda n, r: (0, 0)) if fuse
             else pl.BlockSpec((4, Cs, Coutp), lambda n, r: (0, 0, 0))),
        ]
        out_spec = pl.BlockSpec((None, TH, Wo, Coutp), lambda n, r: (n, r, 0, 0))
        scratch = []
        dims = ("parallel", "parallel")
        kernel = functools.partial(_disc_block_kernel, two_phase=False,
                                   th=TH, cb=Coutp, **kern_common)
    elif R == 1:
        # Single-pass InstanceNorm; channel-block axis feeds both TensorCores
        # even at batch 1 (stats are independent per channel).
        CBLK = Coutp if Coutp <= 128 else 128
        CB = Coutp // CBLK
        grid = (N, CB)
        in_specs = [
            pl.BlockSpec((None, Ho, Ws, Cs), lambda n, c: (n, 0, 0, 0)),
            pl.BlockSpec((None, 1, Ws, Cs), lambda n, c: (n, Ho, 0, 0)),
            (pl.BlockSpec((4 * Cs, CBLK), lambda n, c: (0, c)) if fuse
             else pl.BlockSpec((4, Cs, CBLK), lambda n, c: (0, 0, c))),
        ]
        out_spec = pl.BlockSpec((None, Ho, Wo, CBLK), lambda n, c: (n, 0, 0, c))
        scratch = []
        dims = ("parallel", "parallel")
        kernel = functools.partial(_disc_block_kernel, two_phase=False,
                                   th=Ho, cb=CBLK, **kern_common)
    else:
        # Two-phase fallback: image too large for a single tile.
        grid = (N, 2, R)
        in_specs = [
            pl.BlockSpec((None, TH, Ws, Cs), lambda n, p, r: (n, r, 0, 0)),
            pl.BlockSpec((None, 1, Ws, Cs), lambda n, p, r: (n, (r + 1) * TH, 0, 0)),
            (pl.BlockSpec((4 * Cs, Coutp), lambda n, p, r: (0, 0)) if fuse
             else pl.BlockSpec((4, Cs, Coutp), lambda n, p, r: (0, 0, 0))),
        ]
        # Phase 0 parks the output window on row-block 0 (no HBM writeback for
        # it); phase 1 writes the real, normalized tiles.
        out_spec = pl.BlockSpec((None, TH, Wo, Coutp), lambda n, p, r: (n, r * p, 0, 0))
        scratch = [pltpu.VMEM((1, Coutp), jnp.float32),
                   pltpu.VMEM((1, Coutp), jnp.float32)]
        dims = ("parallel", "arbitrary", "arbitrary")
        kernel = functools.partial(_disc_block_kernel, two_phase=True,
                                   th=TH, cb=Coutp, **kern_common)

    out = pl.pallas_call(
        kernel,
        out_shape=jax.ShapeDtypeStruct((N, Ho, Wo, Coutp), jnp.float32),
        grid_spec=pltpu.PrefetchScalarGridSpec(
            num_scalar_prefetch=0,
            grid=grid,
            in_specs=in_specs,
            out_specs=out_spec,
            scratch_shapes=scratch,
        ),
        compiler_params=pltpu.CompilerParams(
            dimension_semantics=dims,
            vmem_limit_bytes=int(vmem_limit)),
    )(xs, xs, wm)

    # TODO(synk): when chaining discriminator blocks, keep the NHWC padded-Cout
    # bf16 layout end-to-end and drop this boundary slice + transpose.
    return jnp.transpose(out[..., :Cout], (0, 3, 1, 2))


def _reference_forward(x_nchw, weight_oihw, *, stride=2, padding=1,
                       use_norm=False, eps=1e-5, neg_slope=0.2):
    y = lax.conv_general_dilated(
        x_nchw, weight_oihw, window_strides=(stride, stride),
        padding=[(padding, padding), (padding, padding)],
        dimension_numbers=("NCHW", "OIHW", "NCHW"))
    if use_norm:
        mean = jnp.mean(y, axis=(2, 3), keepdims=True)
        var = jnp.mean((y - mean) ** 2, axis=(2, 3), keepdims=True)
        y = (y - mean) * lax.rsqrt(var + eps)
    return jnp.where(y >= 0.0, y, neg_slope * y)


if __name__ == "__main__":
    N, H, W = 2, 16, 16
    key = jax.random.PRNGKey(0)

    configs = [
        # (Cin, Cout, use_norm, max_tile_rows)   -> code path exercised
        (3,  64,  False, None),   # fused taps, no norm
        (3,  64,  True,  None),   # fused taps, single-pass InstanceNorm
        (64, 256, False, None),   # per-tap dots, no norm
        (64, 256, True,  None),   # per-tap dots, norm + channel-block grid
        (3,  64,  False, 4),      # multi row-tile (halo index map with r > 0)
        (3,  64,  True,  4),      # two-phase norm fallback, fused taps
        (64, 256, True,  4),      # two-phase norm fallback, per-tap dots
    ]

    for cin, cout, use_norm, mtr in configs:
        key, kx, kw = jax.random.split(key, 3)
        x = jax.random.normal(kx, (N, cin, H, W), dtype=jnp.float32)
        w = jax.random.normal(kw, (cout, cin, 4, 4), dtype=jnp.float32) * 0.05

        out = jax.block_until_ready(discriminator_block_forward(
            x, w, use_norm=use_norm, max_tile_rows=mtr))
        assert out.shape == (N, cout, H // 2, W // 2), out.shape

        # Kernel computes in bf16 with f32 accumulation: tight check against a
        # bf16-rounded-input f32 reference, loose check against pure f32.
        xq = x.astype(jnp.bfloat16).astype(jnp.float32)
        wq = w.astype(jnp.bfloat16).astype(jnp.float32)
        ref_q = _reference_forward(xq, wq, use_norm=use_norm)
        ref_f = _reference_forward(x, w, use_norm=use_norm)
        assert jnp.allclose(out, ref_q, atol=2e-3, rtol=2e-3), (
            f"mismatch vs bf16-input reference (Cin={cin}, Cout={cout}, "
            f"norm={use_norm}, max_rows={mtr})")
        assert jnp.allclose(out, ref_f, atol=5e-2, rtol=5e-2), (
            f"mismatch vs f32 reference (Cin={cin}, Cout={cout}, "
            f"norm={use_norm}, max_rows={mtr})")

    print("KERNEL_OK")
</pallas_src>

<mosaic_0001>
module attributes {stable_mosaic.version = 11 : i64} {
  func.func @_disc_block_kernel(%arg0: i32, %arg1: i32, %arg2: memref<1x8x9x32xbf16, #tpu.memory_space<vmem>>, %arg3: memref<1x1x9x32xbf16, #tpu.memory_space<vmem>>, %arg4: memref<128x128xbf16, #tpu.memory_space<vmem>>, %arg5: memref<1x8x8x128xf32, #tpu.memory_space<vmem>>) attributes {dimension_semantics = [#tpu.dimension_semantics<parallel>, #tpu.dimension_semantics<parallel>], iteration_bounds = array<i64: 2, 1>, scalar_prefetch = 0 : i64, scratch_operands = 0 : i64, tpu.core_type = #tpu.core_type<tc>, window_params = [{transform_indices = @transform_0, window_bounds = array<i64: 1, 8, 9, 32>}, {transform_indices = @transform_1, window_bounds = array<i64: 1, 1, 9, 32>}, {pipeline_mode = #tpu.pipeline_mode<synchronous>, transform_indices = @transform_2, window_bounds = array<i64: 128, 128>}, {transform_indices = @transform_3, window_bounds = array<i64: 1, 8, 8, 128>}]} {
    %c0 = arith.constant 0 : index
    %c0_0 = arith.constant 0 : index
    %c0_1 = arith.constant 0 : index
    %c0_2 = arith.constant 0 : index
    %0 = vector.load %arg2[%c0, %c0_0, %c0_1, %c0_2] : memref<1x8x9x32xbf16, #tpu.memory_space<vmem>>, vector<1x8x9x32xbf16>
    %1 = vector.shape_cast %0 : vector<1x8x9x32xbf16> to vector<8x9x32xbf16>
    %2 = vector.extract_strided_slice %1 {offsets = [1, 0, 0], sizes = [7, 9, 32], strides = [1, 1, 1]} : vector<8x9x32xbf16> to vector<7x9x32xbf16>
    %c0_3 = arith.constant 0 : index
    %c0_4 = arith.constant 0 : index
    %c0_5 = arith.constant 0 : index
    %c0_6 = arith.constant 0 : index
    %3 = vector.load %arg3[%c0_3, %c0_4, %c0_5, %c0_6] : memref<1x1x9x32xbf16, #tpu.memory_space<vmem>>, vector<1x1x9x32xbf16>
    %4 = vector.shape_cast %3 : vector<1x1x9x32xbf16> to vector<1x9x32xbf16>
    %5 = tpu.concatenate %2, %4 in 0 : vector<7x9x32xbf16>, vector<1x9x32xbf16> -> vector<8x9x32xbf16>
    %6 = vector.extract_strided_slice %1 {offsets = [0, 0, 0], sizes = [8, 8, 32], strides = [1, 1, 1]} : vector<8x9x32xbf16> to vector<8x8x32xbf16>
    %7 = vector.extract_strided_slice %1 {offsets = [0, 1, 0], sizes = [8, 8, 32], strides = [1, 1, 1]} : vector<8x9x32xbf16> to vector<8x8x32xbf16>
    %8 = vector.extract_strided_slice %5 {offsets = [0, 0, 0], sizes = [8, 8, 32], strides = [1, 1, 1]} : vector<8x9x32xbf16> to vector<8x8x32xbf16>
    %9 = vector.extract_strided_slice %5 {offsets = [0, 1, 0], sizes = [8, 8, 32], strides = [1, 1, 1]} : vector<8x9x32xbf16> to vector<8x8x32xbf16>
    %10 = tpu.concatenate %6, %7, %8, %9 in 2 : vector<8x8x32xbf16>, vector<8x8x32xbf16>, vector<8x8x32xbf16>, vector<8x8x32xbf16> -> vector<8x8x128xbf16>
    %11 = vector.shape_cast %10 : vector<8x8x128xbf16> to vector<64x128xbf16>
    %c0_7 = arith.constant 0 : index
    %c0_8 = arith.constant 0 : index
    %12 = vector.load %arg4[%c0_7, %c0_8] : memref<128x128xbf16, #tpu.memory_space<vmem>>, vector<128x128xbf16>
    %cst = arith.constant dense<0.000000e+00> : vector<64x128xf32>
    %13 = tpu.matmul %11, %12, %cst {dimension_numbers = #tpu.dot_dimension_numbers<[1], [0], [0], [1], [0, 0, 1, 1], [], []>} : vector<64x128xbf16>, vector<128x128xbf16>, vector<64x128xf32> -> vector<64x128xf32>
    %cst_9 = arith.constant 2.000000e-01 : f32
    %14 = vector.broadcast %cst_9 : f32 to vector<64x128xf32>
    %15 = arith.mulf %14, %13 : vector<64x128xf32>
    %16 = arith.maximumf %13, %15 : vector<64x128xf32>
    %17 = vector.shape_cast %16 : vector<64x128xf32> to vector<8x8x128xf32>
    %c0_10 = arith.constant 0 : index
    %c0_11 = arith.constant 0 : index
    %c0_12 = arith.constant 0 : index
    %c0_13 = arith.constant 0 : index
    %18 = vector.load %arg5[%c0_10, %c0_11, %c0_12, %c0_13] : memref<1x8x8x128xf32, #tpu.memory_space<vmem>>, vector<1x8x8x128xf32>
    %19 = vector.shape_cast %18 : vector<1x8x8x128xf32> to vector<8x8x128xf32>
    %20 = vector.shape_cast %17 : vector<8x8x128xf32> to vector<1x8x8x128xf32>
    tpu.vector_store %arg5[%c0_10, %c0_11, %c0_12, %c0_13], %20 {strides = array<i32>} : memref<1x8x8x128xf32, #tpu.memory_space<vmem>>, vector<1x8x8x128xf32>,
    return
  }
  func.func @transform_0(%arg0: i32, %arg1: i32) -> (i32, i32, i32, i32) {
    %c0_i32 = arith.constant 0 : i32
    %c0_i32_0 = arith.constant 0 : i32
    %c0_i32_1 = arith.constant 0 : i32
    return %arg0, %arg1, %c0_i32, %c0_i32_0 : i32, i32, i32, i32
  }
  func.func @transform_1(%arg0: i32, %arg1: i32) -> (i32, i32, i32, i32) {
    %c1_i32 = arith.constant 1 : i32
    %0 = arith.addi %arg1, %c1_i32 : i32
    %c8_i32 = arith.constant 8 : i32
    %1 = arith.muli %0, %c8_i32 : i32
    %c0_i32 = arith.constant 0 : i32
    %c0_i32_0 = arith.constant 0 : i32
    %c0_i32_1 = arith.constant 0 : i32
    return %arg0, %1, %c0_i32, %c0_i32_0 : i32, i32, i32, i32
  }
  func.func @transform_2(%arg0: i32, %arg1: i32) -> (i32, i32) {
    %c0_i32 = arith.constant 0 : i32
    %c0_i32_0 = arith.constant 0 : i32
    %c0_i32_1 = arith.constant 0 : i32
    return %c0_i32, %c0_i32_0 : i32, i32
  }
  func.func @transform_3(%arg0: i32, %arg1: i32) -> (i32, i32, i32, i32) {
    %c0_i32 = arith.constant 0 : i32
    %c0_i32_0 = arith.constant 0 : i32
    %c0_i32_1 = arith.constant 0 : i32
    return %arg0, %arg1, %c0_i32, %c0_i32_0 : i32, i32, i32, i32
  }
}

</mosaic_0001>

<bundles_post_ra>
// kernel: discriminator_block_forward.1
= control target key start
LH: loop header
LB: loop body
LE: loop exit
PB: predicated region body
PF: predicated region fallthrough
CT: control target
= control target key end

     0   :  { %s1013_s12 = smov 0   ;;  %s1015_s13 = smov 0   ;;  %s1205_s0 = inlined_call_operand.vmem [shape: bf16[2,9,9,32], index: 0, kind: input, shape index: {}, may-alias: {0,1}]   ;;  %s1206_s1 = inlined_call_operand.vmem [shape: bf16[2,9,9,32], index: 1, kind: input, shape index: {}, may-alias: {0,1}]   ;;  %s1207_s2 = inlined_call_operand.vmem [shape: bf16[128,128], index: 2, kind: input, shape index: {}]   ;;  %s1208_s3 = inlined_call_operand.vmem [shape: f32[2,8,8,128], index: 3, kind: output, shape index: {}]  }
   0x1   :  { %s1017_s14 = smov 0  }
   0x2 LB: > { %s25_s15 = sadd.s32 1, %s984_s13  ;;  %p820_p0 = scmp.ge.s32.totalorder %s988_s14, 1  ;;  %s988_s14 = sphi %s1017_s14, %s13_s14   ;;  %s984_s13 = sphi %s1015_s13, %s1210_s13   ;;  %s980_s12 = sphi %s1013_s12, %s1209_s12  }
   0x3   : > { %p27_p1 = scmp.ge.s32.totalorder %s25_s15, 2  ;;  %p193_p2 = scmp.lt.s32.totalorder %s988_s14, 3 }
   0x5   : > { %s1212_s15 = smov (%p27_p1, %s25_s15), 0  ;;  %p194_p3 = pnand %p820_p0, %p193_p2 }
   0x6   : > { %p248_p4 = scmp.lt.s32.totalorder (!%p194_p3), %s980_s12, 1  ;;  %s990_s20 = smov (!%p194_p3), 64   ;;  %v958_v21 = vld [vmem:[%s1207_s2] sm:$0xff] (!%p194_p3)   ;;  %v959_v41 = vld [vmem:[%s1207_s2 + $0x8] sm:$0xff] (!%p194_p3)   ;;  %v960_v48 = vld [vmem:[%s1207_s2 + $0x10] sm:$0xff] (!%p194_p3)   ;;  %vm469_vm0 = vcmask (!%p194_p3), 261120  }
   0x7   : > { %197 = sbr.rel (%p194_p3) target bundleno = 407 (0x197), region = 32  ;;  %871 = vmatprep.subr.bf16.mxu0 (!%p194_p3), %v958_v21  ;;  %895 = vmatprep.subr.bf16.mxu1 (!%p194_p3), %v958_v21  ;;  %s991_s25 = smov (!%p194_p3), 32   ;;  %v961_v56 = vld [vmem:[%s1207_s2 + $0x18] sm:$0xff] (!%p194_p3)   ;;  %v962_v61 = vld [vmem:[%s1207_s2 + $0x20] sm:$0xff] (!%p194_p3)   ;;  %vm494_vm1 = vcmask (!%p194_p3), 523264   ;;  %vm511_vm2 = vcmask (!%p194_p3), 785408  }
   0x8   : > { %872 = vmatpush3.bf16.msra.mxu0 (!%p194_p3), %v958_v21  ;;  %903 = vmatpush3.bf16.msra.mxu1 (!%p194_p3), %v958_v21 }
   0x9   : > { %873 = vmatprep.subr.bf16.mxu0 (!%p194_p3), %v959_v41  ;;  %896 = vmatprep.subr.bf16.mxu1 (!%p194_p3), %v959_v41 }
   0xc   : > { %874 = vmatpush3.bf16.msra.mxu0 (!%p194_p3), %v959_v41  ;;  %904 = vmatpush3.bf16.msra.mxu1 (!%p194_p3), %v959_v41 }
   0xd   : > { %875 = vmatprep.subr.bf16.mxu0 (!%p194_p3), %v960_v48  ;;  %897 = vmatprep.subr.bf16.mxu1 (!%p194_p3), %v960_v48 }
   0xe   : > { %s1214_s12 = smov (!%p248_p4, %s980_s12), 1 }
   0xf   : > { %s911_s16 = smul.u32 72, %s1214_s12 }
  0x10   : > { %876 = vmatpush3.bf16.msra.mxu0 %v960_v48  ;;  %905 = vmatpush3.bf16.msra.mxu1 %v960_v48 }
  0x11   : > { %s1039_s19 = scalar_lea.vmem %s1205_s0, %s911_s16  ;;  %877 = vmatprep.subr.bf16.mxu0 %v961_v56  ;;  %898 = vmatprep.subr.bf16.mxu1 %v961_v56  ;;  %s857_s5 = sadd.s32 64, %s911_s16 }
  0x12   : > { %v1042_v0 = vld [vmem:[%s1039_s19 + $0x10] sm:$0xf]  ;;  %v292_v1 = vld [vmem:[%s1039_s19 + $0x14] sm:$0x1]  ;;  %v1046_v2 = vld [vmem:[%s1039_s19 + $0x8] sm:$0xf]  ;;  %s273_s10 = scalar_lea.vmem %s1206_s1, %s857_s5 }
  0x13   : > { %v834_v3 = vcombine.low %v1042_v0, %v1042_v0  ;;  %v290_v4 = vld [vmem:[%s1039_s19 + $0xc] sm:$0x1]  ;;  %v833_v5 = vcombine.low %v1046_v2, %v1046_v2  ;;  %v1054_v6 = vld [vmem:[%s1039_s19 + $0x20] sm:$0xf]  ;;  %v296_v7 = vld [vmem:[%s1039_s19 + $0x24] sm:$0x1]  ;;  %v1058_v8 = vcombine.low %v1042_v0, %v292_v1 }
  0x14   : > { %v826_v9 = vcombine.low %v1046_v2, %v290_v4  ;;  %v829_v10 = vcombine.low %v1054_v6, %v296_v7  ;;  %v1063_v11 = vld [vmem:[%s1039_s19] sm:$0xf]  ;;  %v288_v12 = vld [vmem:[%s1039_s19 + $0x4] sm:$0x1]  ;;  %v1067_v13 = vld [vmem:[%s1039_s19 + $0x28] sm:$0xf]  ;;  %878 = vmatpush3.bf16.msra.mxu0 %v961_v56  ;;  %906 = vmatpush3.bf16.msra.mxu1 %v961_v56 }
  0x15   : > { %429 = vrot.lane.b32.xlu1 %v834_v3, %s990_s20  ;;  %427 = vrot.lane.b32.xlu0 %v833_v5, %s990_s20  ;;  %v825_v14 = vcombine.low %v1063_v11, %v288_v12  ;;  %v298_v15 = vld [vmem:[%s1039_s19 + $0x2c] sm:$0x1]  ;;  %v1074_v16 = vld [vmem:[%s1039_s19 + $0x18] sm:$0xf]  ;;  %v362_v30 = vshll.u32 %v1058_v8, 16  ;;  %v360_v50 = vshrl.u32 %v1058_v8, 16  ;;  %v837_v3 = vcombine.low %v1067_v13, %v1067_v13 }
  0x16   : > { %v374_v17 = vshrl.u32 %v829_v10, 16  ;;  %v376_v18 = vshll.u32 %v829_v10, 16  ;;  %v830_v19 = vcombine.low %v1067_v13, %v298_v15  ;;  %v294_v20 = vld [vmem:[%s1039_s19 + $0x1c] sm:$0x1]  ;;  %v355_v24 = vshll.u32 %v826_v9, 16  ;;  %879 = vmatprep.subr.bf16.mxu0 %v962_v61  ;;  %899 = vmatprep.subr.bf16.mxu1 %v962_v61  ;;  %v963_v1 = vld [vmem:[%s1207_s2 + $0x28] sm:$0xff]  }
  0x17   : > { %v346_v22 = vshrl.u32 %v825_v14, 16  ;;  %v348_v23 = vshll.u32 %v825_v14, 16  ;;  %v828_v25 = vcombine.low %v1074_v16, %v294_v20  ;;  %v1083_v26 = vld [vmem:[%s1039_s19 + $0x38] sm:$0xf]  ;;  %v302_v31 = vld [vmem:[%s1039_s19 + $0x3c] sm:$0x1]  ;;  %v836_v5 = vcombine.low %v1054_v6, %v1054_v6 }
  0x18   : > { %v378_v27 = vrot.slane %v376_v18, 1  ;;  %v381_v28 = vshrl.u32 %v830_v19, 16  ;;  %v383_v29 = vshll.u32 %v830_v19, 16  ;;  %v353_v33 = vshrl.u32 %v826_v9, 16  ;;  %v1088_v36 = vld [vmem:[%s1039_s19 + $0x30] sm:$0xf]  ;;  %880 = vmatpush3.bf16.msra.mxu0 %v962_v61  ;;  %907 = vmatpush3.bf16.msra.mxu1 %v962_v61 }
  0x19   : > { %v350_v32 = vrot.slane %v348_v23, 1  ;;  %v357_v34 = vrot.slane %v355_v24, 1  ;;  %v369_v35 = vshll.u32 %v828_v25, 16  ;;  %v832_v39 = vcombine.low %v1083_v26, %v302_v31  ;;  %v300_v40 = vld [vmem:[%s1039_s19 + $0x34] sm:$0x1]  ;;  %881 = vmatprep.subr.bf16.mxu0 %v963_v1  ;;  %900 = vmatprep.subr.bf16.mxu1 %v963_v1  ;;  %v965_v9 = vld [vmem:[%s1207_s2 + $0x38] sm:$0xff]  }
  0x1a   : > { %v1090_v37 = vor.u32 %v378_v27, %v374_v17  ;;  %v385_v38 = vrot.slane %v383_v29, 1  ;;  %v831_v43 = vcombine.low %v1088_v36, %v300_v40  ;;  %v367_v45 = vshrl.u32 %v828_v25, 16  ;;  %v964_v4 = vld [vmem:[%s1207_s2 + $0x30] sm:$0xff]   ;;  %v303_v8 = vld [vmem:[%s273_s10] sm:$0xf]  ;;  %s992_s19 = smov 96  }
  0x1b   : > { %v351_v42 = vor.u32 %v350_v32, %v346_v22  ;;  %v371_v46 = vrot.slane %v369_v35, 1  ;;  %v397_v47 = vshll.u32 %v832_v39, 16  ;;  %v1106_v49 = vor.u32 %v357_v34, %v353_v33  ;;  %v304_v12 = vld [vmem:[%s273_s10 + $0x4] sm:$0x1] }
  0x1c   : > { %409 = vrot.lane.b32.xlu1 %v1090_v37, %s991_s25  ;;  %v1100_v44 = vor.u32 %v385_v38, %v381_v28  ;;  %v364_v51 = vrot.slane %v362_v30, 1  ;;  %v390_v52 = vshll.u32 %v831_v43, 16  ;;  %v395_v54 = vshrl.u32 %v832_v39, 16  ;;  %882 = vmatpush3.bf16.msra.mxu0 %v963_v1 }
  0x1d   : > { %401 = vrot.lane.b32.xlu0 %v351_v42, %s991_s25  ;;  %v1111_v53 = vor.u32 %v371_v46, %v367_v45  ;;  %v399_v55 = vrot.slane %v397_v47, 1  ;;  %v388_v58 = vshrl.u32 %v831_v43, 16  ;;  %v838_v63 = vcombine.low %v1088_v36, %v1088_v36  ;;  %883 = vmatprep.subr.bf16.mxu0 %v964_v4 }
  0x1e   : > { %v365_v57 = vor.u32 %v364_v51, %v360_v50  ;;  %v392_v59 = vrot.slane %v390_v52, 1  ;;  %v835_v7 = vcombine.low %v1074_v16, %v1074_v16  ;;  %908 = vmatpush3.bf16.msra.mxu1 %v963_v1  ;;  %v840_v10 = vcombine.low %v303_v8, %v303_v8 }
  0x1f   : > { %v400_v60 = vor.u32 %v399_v55, %v395_v54  ;;  %901 = vmatprep.subr.bf16.mxu1 %v964_v4  ;;  %v839_v14 = vcombine.low %v1083_v26, %v1083_v26  ;;  %v841_v15 = vcombine.low %v303_v8, %v304_v12 }
  0x20   : > { %411 = vrot.lane.b32.xlu1 %v1100_v44, %s991_s25  ;;  %v393_v62 = vor.u32 %v392_v59, %v388_v58  ;;  %884 = vmatpush3.bf16.msra.mxu0 %v964_v4 }
  0x21   : > { %403 = vrot.lane.b32.xlu0 %v1106_v49, %s991_s25  ;;  %885 = vmatprep.subr.bf16.mxu0 %v965_v9  ;;  %v449_v17 = vshll.u32 %v841_v15, 16  ;;  %v447_v18 = vshrl.u32 %v841_v15, 16 }
  0x22   : > { %909 = vmatpush3.bf16.msra.mxu1 %v964_v4 }
  0x23   : > { %902 = vmatprep.subr.bf16.mxu1 %v965_v9  ;;  %v451_v19 = vrot.slane %v449_v17, 1 }
  0x24   : > { %407 = vrot.lane.b32.xlu1 %v1111_v53, %s991_s25  ;;  %886 = vmatpush3.bf16.msra.mxu0 %v965_v9 }
  0x25   : > { %405 = vrot.lane.b32.xlu0 %v365_v57, %s991_s25  ;;  %v452_v20 = vor.u32 %v451_v19, %v447_v18 }
  0x26   : > { %910 = vmatpush3.bf16.msra.mxu1 %v965_v9 }
  0x28   : > { %415 = vrot.lane.b32.xlu1 %v400_v60, %s991_s25 }
  0x29   : > { %413 = vrot.lane.b32.xlu0 %v393_v62, %s991_s25 }
  0x2c   : > { %437 = vrot.lane.b32.xlu1 %v838_v63, %s990_s20 }
  0x2d   : > { %435 = vrot.lane.b32.xlu0 %v837_v3, %s990_s20 }
  0x30   : > { %433 = vrot.lane.b32.xlu1 %v836_v5, %s990_s20 }
  0x31   : > { %431 = vrot.lane.b32.xlu0 %v835_v7, %s990_s20 }
  0x34   : > { %441 = vrot.lane.b32.xlu1 %v840_v10, %s990_s20 }
  0x35   : > { %439 = vrot.lane.b32.xlu0 %v839_v14, %s990_s20  ;;  %s858_s20 = sshll.u32 %s1214_s12, 6 }
  0x36   : > { %s284_s23 = scalar_lea.vmem %s1208_s3, %s858_s20 }
  0x38   : > { %455 = vrot.lane.b32.xlu1 %v365_v57, %s992_s19 }
  0x39   : > { %453 = vrot.lane.b32.xlu0 %v1106_v49, %s992_s19 }
  0x3c   : > { %463 = vrot.lane.b32.xlu1 %v393_v62, %s992_s19 }
  0x3d   : > { %461 = vrot.lane.b32.xlu0 %v1100_v44, %s992_s19 }
  0x40   : > { %459 = vrot.lane.b32.xlu1 %v1090_v37, %s992_s19 }
  0x41   : > { %457 = vrot.lane.b32.xlu0 %v1111_v53, %s992_s19 }
  0x44   : > { %467 = vrot.lane.b32.xlu1 %v452_v20, %s992_s19 }
  0x45   : > { %465 = vrot.lane.b32.xlu0 %v400_v60, %s992_s19 }
  0x87   : > { %v430_v21 = vpop.permute.xlu1 %429  ;;  %v428_v22 = vpop.permute.xlu0 %427 }
  0x8e   : > { %v410_v23 = vpop.permute.xlu1 %409 }
  0x8f   : > { %v402_v24 = vpop.permute.xlu0 %401  ;;  %v484_v48 = vsel %vm469_vm0, %v1054_v6, %v410_v23 }
  0x90   : > { %v472_v40 = vsel %vm469_vm0, %v1063_v11, %v402_v24 }
  0x91   : > { %v496_v44 = vsel %vm494_vm1, %v472_v40, %v428_v22 }
  0x92   : > { %v412_v25 = vpop.permute.xlu1 %411 }
  0x93   : > { %v404_v27 = vpop.permute.xlu0 %403  ;;  %v487_v47 = vsel %vm469_vm0, %v1067_v13, %v412_v25 }
  0x94   : > { %v475_v38 = vsel %vm469_vm0, %v1046_v2, %v404_v27 }
  0x95   : > { %v498_v42 = vsel %vm494_vm1, %v475_v38, %v430_v21 }
  0x96   : > { %v408_v28 = vpop.permute.xlu1 %407 }
  0x97   : > { %v406_v29 = vpop.permute.xlu0 %405  ;;  %v481_v54 = vsel %vm469_vm0, %v1074_v16, %v408_v28 }
  0x98   : > { %v478_v13 = vsel %vm469_vm0, %v1042_v0, %v406_v29 }
  0x9a   : > { %v416_v30 = vpop.permute.xlu1 %415 }
  0x9b   : > { %v414_v31 = vpop.permute.xlu0 %413  ;;  %v493_v61 = vsel %vm469_vm0, %v1083_v26, %v416_v30 }
  0x9c   : > { %v490_v62 = vsel %vm469_vm0, %v1088_v36, %v414_v31 }
  0x9e   : > { %v438_v32 = vpop.permute.xlu1 %437 }
  0x9f   : > { %v436_v33 = vpop.permute.xlu0 %435  ;;  %v506_v11 = vsel %vm494_vm1, %v487_v47, %v438_v32 }
  0xa0   : > { %v504_v50 = vsel %vm494_vm1, %v484_v48, %v436_v33 }
  0xa2   : > { %v434_v34 = vpop.permute.xlu1 %433 }
  0xa3   : > { %v432_v35 = vpop.permute.xlu0 %431  ;;  %v502_v6 = vsel %vm494_vm1, %v481_v54, %v434_v34 }
  0xa4   : > { %v500_v57 = vsel %vm494_vm1, %v478_v13, %v432_v35 }
  0xa6   : > { %v442_v37 = vpop.permute.xlu1 %441 }
  0xa7   : > { %v440_v39 = vpop.permute.xlu0 %439  ;;  %v510_v0 = vsel %vm494_vm1, %v493_v61, %v442_v37 }
  0xa8   : > { %v508_v1 = vsel %vm494_vm1, %v490_v62, %v440_v39 }
  0xaa   : > { %v456_v41 = vpop.permute.xlu1 %455 }
  0xab   : > { %v454_v43 = vpop.permute.xlu0 %453  ;;  %v515_v45 = vsel %vm511_vm2, %v498_v42, %v456_v41 }
  0xac   : > { %v513_v46 = vsel %vm511_vm2, %v496_v44, %v454_v43 }
  0xad   : > { %v842_v2 = vcombine.low %v513_v46, %v515_v45 }
  0xae   : > { %v464_v49 = vpop.permute.xlu1 %463 }
  0xaf   : > { %887 = vmatprep.mubr.bf16.mxu0 %v842_v2  ;;  %v462_v51 = vpop.permute.xlu0 %461  ;;  %v523_v52 = vsel %vm511_vm2, %v506_v11, %v464_v49 }
  0xb0   : > { %v521_v53 = vsel %vm511_vm2, %v504_v50, %v462_v51 }
  0xb1   : > { %v844_v55 = vcombine.low %v521_v53, %v523_v52 }
  0xb2   : > { %v460_v56 = vpop.permute.xlu1 %459 }
  0xb3   : > { %v519_v58 = vsel %vm511_vm2, %v502_v6, %v460_v56  ;;  %891 = vmatprep.mubr.bf16.mxu1 %v844_v55  ;;  %v458_v59 = vpop.permute.xlu0 %457 }
  0xb4   : > { %v517_v60 = vsel %vm511_vm2, %v500_v57, %v458_v59 }
  0xb5   : > { %v843_v16 = vcombine.low %v517_v60, %v519_v58 }
  0xb6   : > { %v468_v63 = vpop.permute.xlu1 %467 }
  0xb7   : > { %v527_v3 = vsel %vm511_vm2, %v510_v0, %v468_v63  ;;  %888 = vmatmul.mubr.bf16.vlgmr.msra.gmra.mrb[0].mxu0 %v843_v16  ;;  %v466_v4 = vpop.permute.xlu0 %465 }
  0xb8   : > { %v525_v5 = vsel %vm511_vm2, %v508_v1, %v466_v4 }
  0xb9   : > { %v845_v7 = vcombine.low %v525_v5, %v527_v3 }
  0xbb   : > { %892 = vmatmul.mubr.bf16.vlgmr.msra.gmra.mrb[0].mxu1 %v845_v7 }
 0x18a   : > { %v889_v8 = vpop.f32.mrb[0].mxu0 }
 0x18b   : > { %v683_v26 = vmul.f32 0.2, %v889_v8  ;;  %v650_v9 = vpop.f32.mrb[1].mxu0 }
 0x18c   : > { %v681_v36 = vmul.f32 0.2, %v650_v9  ;;  %v890_v10 = vpop.f32.mrb[2].mxu0 }
 0x18d   : > { %v691_v12 = vmax.f32 %v889_v8, %v683_v26  ;;  %v684_v14 = vmul.f32 0.2, %v890_v10  ;;  %v653_v15 = vpop.f32.mrb[3].mxu0 }
 0x18e   : > { %v689_v17 = vmax.f32 %v650_v9, %v681_v36  ;;  %v682_v18 = vmul.f32 0.2, %v653_v15  ;;  %v893_v19 = vpop.f32.mrb[0].mxu1 }
 0x18f   : > { %699 = vst [vmem:[%s284_s23 + $0x10] sm:$0xff] %v691_v12  ;;  %v692_v20 = vmax.f32 %v890_v10, %v684_v14  ;;  %v687_v21 = vmul.f32 0.2, %v893_v19  ;;  %v666_v22 = vpop.f32.mrb[1].mxu1 }
 0x190   : > { %697 = vst [vmem:[%s284_s23] sm:$0xff] %v689_v17  ;;  %v690_v23 = vmax.f32 %v653_v15, %v682_v18  ;;  %v685_v24 = vmul.f32 0.2, %v666_v22  ;;  %v894_v25 = vpop.f32.mrb[2].mxu1 }
 0x191   : > { %700 = vst [vmem:[%s284_s23 + $0x18] sm:$0xff] %v692_v20  ;;  %v695_v27 = vmax.f32 %v893_v19, %v687_v21  ;;  %v688_v28 = vmul.f32 0.2, %v894_v25  ;;  %v669_v29 = vpop.f32.mrb[3].mxu1 }
 0x192   : > { %698 = vst [vmem:[%s284_s23 + $0x8] sm:$0xff] %v690_v23  ;;  %v693_v30 = vmax.f32 %v666_v22, %v685_v24  ;;  %v686_v31 = vmul.f32 0.2, %v669_v29 }
 0x193   : > { %703 = vst [vmem:[%s284_s23 + $0x30] sm:$0xff] %v695_v27  ;;  %v696_v32 = vmax.f32 %v894_v25, %v688_v28 }
 0x194   : > { %701 = vst [vmem:[%s284_s23 + $0x20] sm:$0xff] %v693_v30  ;;  %v694_v33 = vmax.f32 %v669_v29, %v686_v31 }
 0x195   : > { %704 = vst [vmem:[%s284_s23 + $0x38] sm:$0xff] %v696_v32 }
 0x196   : > { %702 = vst [vmem:[%s284_s23 + $0x28] sm:$0xff] %v694_v33 }
 0x197 PF: > { %s13_s14 = sadd.s32 1, %s988_s14   ;;  %s1209_s12 = smov %s984_s13 }
 0x198   : > { %p10_p5 = scmp.ge.s32.totalorder %s13_s14, 4   ;;  %s1210_s13 = smov %s1212_s15 }
 0x19a   :  { %12 = sbr.rel (!%p10_p5) target bundleno = 2 (0x2), region = 65 }

</bundles_post_ra>
